<compile_context>
chip_gen: v6e
topology: v6e:2x2x1
jax: 0.10.0
libtpu: 0.0.40
codegen_flags: <defaults>
</compile_context>

<pallas_src>
import jax
import jax.numpy as jnp
from jax.experimental import pallas as pl
from jax.experimental.pallas import tpu as pltpu


def ppnet_kernel(x_ref, wih_ref, whh_ref, b_ref, wmv_ref, bmv_ref, out_ref):
    # Static shapes.
    Bp, O2 = out_ref.shape           # padded batch, 2*output_size
    H = whh_ref.shape[0]
    T = x_ref.shape[0] // Bp
    H3 = 3 * H
    mxu_dt = whh_ref.dtype           # bf16 on v6e/v7x path, f32 otherwise

    whh = whh_ref[...]               # (H, 4H)   gate order (i,f,o,g); i/f/o cols * 0.5
    wmv = wmv_ref[...]               # (T*H, 2O) [Wm.T | Wv.T]
    b_all = b_ref[...]               # (1, 4H)   f32, i/f/o cols * 0.5

    # Hoisted input projection for ALL timesteps: one MXU op over T*Bp rows,
    # f32 accumulation regardless of operand dtype.
    gx = jnp.dot(x_ref[...], wih_ref[...],
                 preferred_element_type=jnp.float32) + b_all        # (T*Bp, 4H) f32

    h = jnp.zeros((Bp, H), jnp.float32)
    hb = h.astype(mxu_dt)
    c = jnp.zeros((Bp, H), jnp.float32)
    acc = jnp.zeros((Bp, O2), jnp.float32)

    # Static unroll: T is a small compile-time constant; all row slices below
    # are sublane-aligned (Bp, H multiples of 8 / 8).
    for t in range(T):
        gates = gx[t * Bp:(t + 1) * Bp, :] + jnp.dot(
            hb, whh, preferred_element_type=jnp.float32)            # (Bp, 4H) f32
        # One EUP push for all gates: tanh over the full slab.  The i/f/o
        # pre-activations were pre-scaled by 0.5 in the wrapper, so
        # sigmoid(x) = 0.5*(tanh(x/2)+1) is just a VPU affine fixup here.
        th = jnp.tanh(gates)
        sig = 0.5 * (th[:, :H3] + 1.0)                              # (Bp, 3H)
        i_g = sig[:, :H]
        f_g = sig[:, H:2 * H]
        o_g = sig[:, 2 * H:]
        g_g = th[:, H3:]                                            # tanh(g)
        c = f_g * c + i_g * g_g
        h = o_g * jnp.tanh(c)                                       # 2nd EUP push
        hb = h.astype(mxu_dt)
        # Per-step head contribution; depends only on h_t, so it overlaps
        # with the next step's recurrence instead of an exposed epilogue.
        acc = acc + jnp.dot(hb, wmv[t * H:(t + 1) * H, :],
                            preferred_element_type=jnp.float32)     # (Bp, 2O)

    out_ref[...] = acc + bmv_ref[...]                               # (Bp, 2O)


def ppnet_forward(x, params, mxu_dtype=jnp.float32):
    """x: (B, T, D_in) batch_first, like the PyTorch module.

    mxu_dtype: dtype of the MXU operands (weights / activations at the dot
    sites).  jnp.bfloat16 is the v6e/v7x-native fast path; jnp.float32 is the
    bit-accurate path and the recommended default on v5e.
    """
    W_ih, W_hh, b_ih, b_hh, Wm, bm, Wv, bv = params
    B, T, D_in = x.shape
    H = W_hh.shape[1]
    O = Wm.shape[0]
    Bp = max(8, ((B + 7) // 8) * 8)   # pad batch to the 8-row sublane count

    # ---- parameter re-arrangement (plain JAX glue, outside the kernel) ----
    order = jnp.array([0, 1, 3, 2])   # PyTorch (i, f, g, o) -> (i, f, o, g)
    # 0.5 pre-scale on the i/f/o columns enables sigmoid-via-tanh in-kernel.
    col_scale = jnp.concatenate(
        [jnp.full((3 * H,), 0.5, jnp.float32),
         jnp.ones((H,), jnp.float32)]).reshape(1, 4 * H)

    wih = jnp.transpose(W_ih.reshape(4, H, D_in)[order], (2, 0, 1)) \
             .reshape(D_in, 4 * H) * col_scale                      # (D_in, 4H)
    whh = jnp.transpose(W_hh.reshape(4, H, H)[order], (2, 0, 1)) \
             .reshape(H, 4 * H) * col_scale                         # (H, 4H)
    b_all = (b_ih + b_hh).reshape(4, H)[order].reshape(1, 4 * H) * col_scale

    wmv = jnp.concatenate([Wm, Wv], axis=0).T                       # (T*H, 2O)
    bmv = jnp.concatenate([bm, bv]).reshape(1, 2 * O)               # (1, 2O)

    # time-major, batch zero-padded to Bp rows so per-step slices are
    # vreg/sublane aligned inside the kernel.
    x_tm = jnp.swapaxes(x, 0, 1)                                    # (T, B, D_in)
    x_tm = jnp.pad(x_tm, ((0, 0), (0, Bp - B), (0, 0)))             # (T, Bp, D_in)
    x_tm = x_tm.reshape(T * Bp, D_in)                               # (T*Bp, D_in)

    # MXU operand dtype (biases stay f32; f32 accumulation in-kernel).
    x_tm = x_tm.astype(mxu_dtype)
    wih = wih.astype(mxu_dtype)
    whh = whh.astype(mxu_dtype)
    wmv = wmv.astype(mxu_dtype)

    vmem = pl.BlockSpec(memory_space=pltpu.MemorySpace.VMEM)
    out = pl.pallas_call(
        ppnet_kernel,
        out_shape=jax.ShapeDtypeStruct((Bp, 2 * O), jnp.float32),
        in_specs=[vmem] * 6,
        out_specs=vmem,
    )(x_tm, wih, whh, b_all, wmv, bmv)

    # Drop padded rows, split the single lane-contiguous output into heads.
    return out[:B, :O], out[:B, O:]


def ppnet_reference(x, params):
    """Pure-JAX reference matching PyTorch nn.LSTM + nn.Linear semantics."""
    W_ih, W_hh, b_ih, b_hh, Wm, bm, Wv, bv = params
    B, T, _ = x.shape
    H = W_hh.shape[1]

    def step(carry, x_t):
        h, c = carry
        gates = x_t @ W_ih.T + b_ih + h @ W_hh.T + b_hh
        i = jax.nn.sigmoid(gates[:, 0:H])
        f = jax.nn.sigmoid(gates[:, H:2 * H])
        g = jnp.tanh(gates[:, 2 * H:3 * H])
        o = jax.nn.sigmoid(gates[:, 3 * H:4 * H])
        c = f * c + i * g
        h = o * jnp.tanh(c)
        return (h, c), h

    h0 = jnp.zeros((B, H), jnp.float32)
    (_, _), hs = jax.lax.scan(step, (h0, h0), jnp.swapaxes(x, 0, 1))
    feat = jnp.swapaxes(hs, 0, 1).reshape(B, T * H)
    return feat @ Wm.T + bm, feat @ Wv.T + bv


def init_params(key, input_size, output_size, seq, hidden_size):
    ks = jax.random.split(key, 8)
    k_lstm = 1.0 / jnp.sqrt(hidden_size)
    k_fc = 1.0 / jnp.sqrt(seq * hidden_size)
    u = lambda k, shape, s: jax.random.uniform(k, shape, jnp.float32, -s, s)
    W_ih = u(ks[0], (4 * hidden_size, input_size), k_lstm)
    W_hh = u(ks[1], (4 * hidden_size, hidden_size), k_lstm)
    b_ih = u(ks[2], (4 * hidden_size,), k_lstm)
    b_hh = u(ks[3], (4 * hidden_size,), k_lstm)
    Wm = u(ks[4], (output_size, seq * hidden_size), k_fc)
    bm = u(ks[5], (output_size,), k_fc)
    Wv = u(ks[6], (output_size, seq * hidden_size), k_fc)
    bv = u(ks[7], (output_size,), k_fc)
    return (W_ih, W_hh, b_ih, b_hh, Wm, bm, Wv, bv)


if __name__ == "__main__":
    # Small shapes consistent with PPnet(input_size=6, output_size=6,
    # seq=8, hidden_size=8, num_layer=1, batch_first=True)
    B, T, D_IN, H, O = 2, 8, 6, 8, 6

    key = jax.random.PRNGKey(0)
    k_x, k_p = jax.random.split(key)
    x = jax.random.normal(k_x, (B, T, D_IN), jnp.float32)
    params = init_params(k_p, D_IN, O, T, H)

    mean_ref, var_ref = ppnet_reference(x, params)

    # f32 MXU operands: bit-accurate path (also the v5e recommendation).
    mean32, var32 = jax.block_until_ready(
        ppnet_forward(x, params, mxu_dtype=jnp.float32))
    assert mean32.shape == (B, O) and var32.shape == (B, O)
    assert jnp.allclose(mean32, mean_ref, rtol=1e-4, atol=1e-5), "mean mismatch (f32)"
    assert jnp.allclose(var32, var_ref, rtol=1e-4, atol=1e-5), "variance mismatch (f32)"

    # bf16 MXU operands (v6e/v7x-native path); accumulation stays f32, so
    # only operand-rounding error remains -> loosened tolerance per review.
    mean16, var16 = jax.block_until_ready(
        ppnet_forward(x, params, mxu_dtype=jnp.bfloat16))
    assert jnp.allclose(mean16, mean_ref, rtol=5e-2, atol=1e-2), "mean mismatch (bf16)"
    assert jnp.allclose(var16, var_ref, rtol=5e-2, atol=1e-2), "variance mismatch (bf16)"

    print("KERNEL_OK")
</pallas_src>

<mosaic_0001>
module attributes {stable_mosaic.version = 11 : i64} {
  func.func @ppnet_kernel(%arg0: memref<64x6xf32, #tpu.memory_space<vmem>>, %arg1: memref<6x32xf32, #tpu.memory_space<vmem>>, %arg2: memref<8x32xf32, #tpu.memory_space<vmem>>, %arg3: memref<1x32xf32, #tpu.memory_space<vmem>>, %arg4: memref<64x12xf32, #tpu.memory_space<vmem>>, %arg5: memref<1x12xf32, #tpu.memory_space<vmem>>, %arg6: memref<8x12xf32, #tpu.memory_space<vmem>>) attributes {dimension_semantics = [], scalar_prefetch = 0 : i64, scratch_operands = 0 : i64, tpu.core_type = #tpu.core_type<tc>} {
    %c0 = arith.constant 0 : index
    %c0_0 = arith.constant 0 : index
    %0 = vector.load %arg2[%c0, %c0_0] : memref<8x32xf32, #tpu.memory_space<vmem>>, vector<8x32xf32>
    %c0_1 = arith.constant 0 : index
    %c0_2 = arith.constant 0 : index
    %1 = vector.load %arg4[%c0_1, %c0_2] : memref<64x12xf32, #tpu.memory_space<vmem>>, vector<64x12xf32>
    %c0_3 = arith.constant 0 : index
    %c0_4 = arith.constant 0 : index
    %2 = vector.load %arg3[%c0_3, %c0_4] : memref<1x32xf32, #tpu.memory_space<vmem>>, vector<1x32xf32>
    %c0_5 = arith.constant 0 : index
    %c0_6 = arith.constant 0 : index
    %3 = vector.load %arg0[%c0_5, %c0_6] : memref<64x6xf32, #tpu.memory_space<vmem>>, vector<64x6xf32>
    %c0_7 = arith.constant 0 : index
    %c0_8 = arith.constant 0 : index
    %4 = vector.load %arg1[%c0_7, %c0_8] : memref<6x32xf32, #tpu.memory_space<vmem>>, vector<6x32xf32>
    %cst = arith.constant dense<0.000000e+00> : vector<64x32xf32>
    %5 = tpu.matmul %3, %4, %cst {dimension_numbers = #tpu.dot_dimension_numbers<[1], [0], [0], [1], [0, 0, 1, 1], [], []>} : vector<64x6xf32>, vector<6x32xf32>, vector<64x32xf32> -> vector<64x32xf32>
    %6 = vector.broadcast %2 : vector<1x32xf32> to vector<64x32xf32>
    %7 = arith.addf %5, %6 : vector<64x32xf32>
    %cst_9 = arith.constant 0.000000e+00 : f32
    %8 = vector.broadcast %cst_9 : f32 to vector<8x8xf32>
    %cst_10 = arith.constant 0.000000e+00 : f32
    %9 = vector.broadcast %cst_10 : f32 to vector<8x8xf32>
    %cst_11 = arith.constant 0.000000e+00 : f32
    %10 = vector.broadcast %cst_11 : f32 to vector<8x12xf32>
    %11 = vector.extract_strided_slice %7 {offsets = [0, 0], sizes = [8, 32], strides = [1, 1]} : vector<64x32xf32> to vector<8x32xf32>
    %cst_12 = arith.constant dense<0.000000e+00> : vector<8x32xf32>
    %12 = tpu.matmul %8, %0, %cst_12 {dimension_numbers = #tpu.dot_dimension_numbers<[1], [0], [0], [1], [0, 0, 1, 1], [], []>} : vector<8x8xf32>, vector<8x32xf32>, vector<8x32xf32> -> vector<8x32xf32>
    %13 = arith.addf %11, %12 : vector<8x32xf32>
    %14 = math.tanh %13 : vector<8x32xf32>
    %15 = vector.extract_strided_slice %14 {offsets = [0, 0], sizes = [8, 24], strides = [1, 1]} : vector<8x32xf32> to vector<8x24xf32>
    %cst_13 = arith.constant 1.000000e+00 : f32
    %16 = vector.broadcast %cst_13 : f32 to vector<8x24xf32>
    %17 = arith.addf %15, %16 : vector<8x24xf32>
    %cst_14 = arith.constant 5.000000e-01 : f32
    %18 = vector.broadcast %cst_14 : f32 to vector<8x24xf32>
    %19 = arith.mulf %18, %17 : vector<8x24xf32>
    %20 = vector.extract_strided_slice %19 {offsets = [0, 0], sizes = [8, 8], strides = [1, 1]} : vector<8x24xf32> to vector<8x8xf32>
    %21 = vector.extract_strided_slice %19 {offsets = [0, 8], sizes = [8, 8], strides = [1, 1]} : vector<8x24xf32> to vector<8x8xf32>
    %22 = vector.extract_strided_slice %19 {offsets = [0, 16], sizes = [8, 8], strides = [1, 1]} : vector<8x24xf32> to vector<8x8xf32>
    %23 = vector.extract_strided_slice %14 {offsets = [0, 24], sizes = [8, 8], strides = [1, 1]} : vector<8x32xf32> to vector<8x8xf32>
    %24 = arith.mulf %21, %9 : vector<8x8xf32>
    %25 = arith.mulf %20, %23 : vector<8x8xf32>
    %26 = arith.addf %24, %25 : vector<8x8xf32>
    %27 = math.tanh %26 : vector<8x8xf32>
    %28 = arith.mulf %22, %27 : vector<8x8xf32>
    %29 = vector.extract_strided_slice %1 {offsets = [0, 0], sizes = [8, 12], strides = [1, 1]} : vector<64x12xf32> to vector<8x12xf32>
    %cst_15 = arith.constant dense<0.000000e+00> : vector<8x12xf32>
    %30 = tpu.matmul %28, %29, %cst_15 {dimension_numbers = #tpu.dot_dimension_numbers<[1], [0], [0], [1], [0, 0, 1, 1], [], []>} : vector<8x8xf32>, vector<8x12xf32>, vector<8x12xf32> -> vector<8x12xf32>
    %31 = arith.addf %10, %30 : vector<8x12xf32>
    %32 = vector.extract_strided_slice %7 {offsets = [8, 0], sizes = [8, 32], strides = [1, 1]} : vector<64x32xf32> to vector<8x32xf32>
    %cst_16 = arith.constant dense<0.000000e+00> : vector<8x32xf32>
    %33 = tpu.matmul %28, %0, %cst_16 {dimension_numbers = #tpu.dot_dimension_numbers<[1], [0], [0], [1], [0, 0, 1, 1], [], []>} : vector<8x8xf32>, vector<8x32xf32>, vector<8x32xf32> -> vector<8x32xf32>
    %34 = arith.addf %32, %33 : vector<8x32xf32>
    %35 = math.tanh %34 : vector<8x32xf32>
    %36 = vector.extract_strided_slice %35 {offsets = [0, 0], sizes = [8, 24], strides = [1, 1]} : vector<8x32xf32> to vector<8x24xf32>
    %cst_17 = arith.constant 1.000000e+00 : f32
    %37 = vector.broadcast %cst_17 : f32 to vector<8x24xf32>
    %38 = arith.addf %36, %37 : vector<8x24xf32>
    %cst_18 = arith.constant 5.000000e-01 : f32
    %39 = vector.broadcast %cst_18 : f32 to vector<8x24xf32>
    %40 = arith.mulf %39, %38 : vector<8x24xf32>
    %41 = vector.extract_strided_slice %40 {offsets = [0, 0], sizes = [8, 8], strides = [1, 1]} : vector<8x24xf32> to vector<8x8xf32>
    %42 = vector.extract_strided_slice %40 {offsets = [0, 8], sizes = [8, 8], strides = [1, 1]} : vector<8x24xf32> to vector<8x8xf32>
    %43 = vector.extract_strided_slice %40 {offsets = [0, 16], sizes = [8, 8], strides = [1, 1]} : vector<8x24xf32> to vector<8x8xf32>
    %44 = vector.extract_strided_slice %35 {offsets = [0, 24], sizes = [8, 8], strides = [1, 1]} : vector<8x32xf32> to vector<8x8xf32>
    %45 = arith.mulf %42, %26 : vector<8x8xf32>
    %46 = arith.mulf %41, %44 : vector<8x8xf32>
    %47 = arith.addf %45, %46 : vector<8x8xf32>
    %48 = math.tanh %47 : vector<8x8xf32>
    %49 = arith.mulf %43, %48 : vector<8x8xf32>
    %50 = vector.extract_strided_slice %1 {offsets = [8, 0], sizes = [8, 12], strides = [1, 1]} : vector<64x12xf32> to vector<8x12xf32>
    %cst_19 = arith.constant dense<0.000000e+00> : vector<8x12xf32>
    %51 = tpu.matmul %49, %50, %cst_19 {dimension_numbers = #tpu.dot_dimension_numbers<[1], [0], [0], [1], [0, 0, 1, 1], [], []>} : vector<8x8xf32>, vector<8x12xf32>, vector<8x12xf32> -> vector<8x12xf32>
    %52 = arith.addf %31, %51 : vector<8x12xf32>
    %53 = vector.extract_strided_slice %7 {offsets = [16, 0], sizes = [8, 32], strides = [1, 1]} : vector<64x32xf32> to vector<8x32xf32>
    %cst_20 = arith.constant dense<0.000000e+00> : vector<8x32xf32>
    %54 = tpu.matmul %49, %0, %cst_20 {dimension_numbers = #tpu.dot_dimension_numbers<[1], [0], [0], [1], [0, 0, 1, 1], [], []>} : vector<8x8xf32>, vector<8x32xf32>, vector<8x32xf32> -> vector<8x32xf32>
    %55 = arith.addf %53, %54 : vector<8x32xf32>
    %56 = math.tanh %55 : vector<8x32xf32>
    %57 = vector.extract_strided_slice %56 {offsets = [0, 0], sizes = [8, 24], strides = [1, 1]} : vector<8x32xf32> to vector<8x24xf32>
    %cst_21 = arith.constant 1.000000e+00 : f32
    %58 = vector.broadcast %cst_21 : f32 to vector<8x24xf32>
    %59 = arith.addf %57, %58 : vector<8x24xf32>
    %cst_22 = arith.constant 5.000000e-01 : f32
    %60 = vector.broadcast %cst_22 : f32 to vector<8x24xf32>
    %61 = arith.mulf %60, %59 : vector<8x24xf32>
    %62 = vector.extract_strided_slice %61 {offsets = [0, 0], sizes = [8, 8], strides = [1, 1]} : vector<8x24xf32> to vector<8x8xf32>
    %63 = vector.extract_strided_slice %61 {offsets = [0, 8], sizes = [8, 8], strides = [1, 1]} : vector<8x24xf32> to vector<8x8xf32>
    %64 = vector.extract_strided_slice %61 {offsets = [0, 16], sizes = [8, 8], strides = [1, 1]} : vector<8x24xf32> to vector<8x8xf32>
    %65 = vector.extract_strided_slice %56 {offsets = [0, 24], sizes = [8, 8], strides = [1, 1]} : vector<8x32xf32> to vector<8x8xf32>
    %66 = arith.mulf %63, %47 : vector<8x8xf32>
    %67 = arith.mulf %62, %65 : vector<8x8xf32>
    %68 = arith.addf %66, %67 : vector<8x8xf32>
    %69 = math.tanh %68 : vector<8x8xf32>
    %70 = arith.mulf %64, %69 : vector<8x8xf32>
    %71 = vector.extract_strided_slice %1 {offsets = [16, 0], sizes = [8, 12], strides = [1, 1]} : vector<64x12xf32> to vector<8x12xf32>
    %cst_23 = arith.constant dense<0.000000e+00> : vector<8x12xf32>
    %72 = tpu.matmul %70, %71, %cst_23 {dimension_numbers = #tpu.dot_dimension_numbers<[1], [0], [0], [1], [0, 0, 1, 1], [], []>} : vector<8x8xf32>, vector<8x12xf32>, vector<8x12xf32> -> vector<8x12xf32>
    %73 = arith.addf %52, %72 : vector<8x12xf32>
    %74 = vector.extract_strided_slice %7 {offsets = [24, 0], sizes = [8, 32], strides = [1, 1]} : vector<64x32xf32> to vector<8x32xf32>
    %cst_24 = arith.constant dense<0.000000e+00> : vector<8x32xf32>
    %75 = tpu.matmul %70, %0, %cst_24 {dimension_numbers = #tpu.dot_dimension_numbers<[1], [0], [0], [1], [0, 0, 1, 1], [], []>} : vector<8x8xf32>, vector<8x32xf32>, vector<8x32xf32> -> vector<8x32xf32>
    %76 = arith.addf %74, %75 : vector<8x32xf32>
    %77 = math.tanh %76 : vector<8x32xf32>
    %78 = vector.extract_strided_slice %77 {offsets = [0, 0], sizes = [8, 24], strides = [1, 1]} : vector<8x32xf32> to vector<8x24xf32>
    %cst_25 = arith.constant 1.000000e+00 : f32
    %79 = vector.broadcast %cst_25 : f32 to vector<8x24xf32>
    %80 = arith.addf %78, %79 : vector<8x24xf32>
    %cst_26 = arith.constant 5.000000e-01 : f32
    %81 = vector.broadcast %cst_26 : f32 to vector<8x24xf32>
    %82 = arith.mulf %81, %80 : vector<8x24xf32>
    %83 = vector.extract_strided_slice %82 {offsets = [0, 0], sizes = [8, 8], strides = [1, 1]} : vector<8x24xf32> to vector<8x8xf32>
    %84 = vector.extract_strided_slice %82 {offsets = [0, 8], sizes = [8, 8], strides = [1, 1]} : vector<8x24xf32> to vector<8x8xf32>
    %85 = vector.extract_strided_slice %82 {offsets = [0, 16], sizes = [8, 8], strides = [1, 1]} : vector<8x24xf32> to vector<8x8xf32>
    %86 = vector.extract_strided_slice %77 {offsets = [0, 24], sizes = [8, 8], strides = [1, 1]} : vector<8x32xf32> to vector<8x8xf32>
    %87 = arith.mulf %84, %68 : vector<8x8xf32>
    %88 = arith.mulf %83, %86 : vector<8x8xf32>
    %89 = arith.addf %87, %88 : vector<8x8xf32>
    %90 = math.tanh %89 : vector<8x8xf32>
    %91 = arith.mulf %85, %90 : vector<8x8xf32>
    %92 = vector.extract_strided_slice %1 {offsets = [24, 0], sizes = [8, 12], strides = [1, 1]} : vector<64x12xf32> to vector<8x12xf32>
    %cst_27 = arith.constant dense<0.000000e+00> : vector<8x12xf32>
    %93 = tpu.matmul %91, %92, %cst_27 {dimension_numbers = #tpu.dot_dimension_numbers<[1], [0], [0], [1], [0, 0, 1, 1], [], []>} : vector<8x8xf32>, vector<8x12xf32>, vector<8x12xf32> -> vector<8x12xf32>
    %94 = arith.addf %73, %93 : vector<8x12xf32>
    %95 = vector.extract_strided_slice %7 {offsets = [32, 0], sizes = [8, 32], strides = [1, 1]} : vector<64x32xf32> to vector<8x32xf32>
    %cst_28 = arith.constant dense<0.000000e+00> : vector<8x32xf32>
    %96 = tpu.matmul %91, %0, %cst_28 {dimension_numbers = #tpu.dot_dimension_numbers<[1], [0], [0], [1], [0, 0, 1, 1], [], []>} : vector<8x8xf32>, vector<8x32xf32>, vector<8x32xf32> -> vector<8x32xf32>
    %97 = arith.addf %95, %96 : vector<8x32xf32>
    %98 = math.tanh %97 : vector<8x32xf32>
    %99 = vector.extract_strided_slice %98 {offsets = [0, 0], sizes = [8, 24], strides = [1, 1]} : vector<8x32xf32> to vector<8x24xf32>
    %cst_29 = arith.constant 1.000000e+00 : f32
    %100 = vector.broadcast %cst_29 : f32 to vector<8x24xf32>
    %101 = arith.addf %99, %100 : vector<8x24xf32>
    %cst_30 = arith.constant 5.000000e-01 : f32
    %102 = vector.broadcast %cst_30 : f32 to vector<8x24xf32>
    %103 = arith.mulf %102, %101 : vector<8x24xf32>
    %104 = vector.extract_strided_slice %103 {offsets = [0, 0], sizes = [8, 8], strides = [1, 1]} : vector<8x24xf32> to vector<8x8xf32>
    %105 = vector.extract_strided_slice %103 {offsets = [0, 8], sizes = [8, 8], strides = [1, 1]} : vector<8x24xf32> to vector<8x8xf32>
    %106 = vector.extract_strided_slice %103 {offsets = [0, 16], sizes = [8, 8], strides = [1, 1]} : vector<8x24xf32> to vector<8x8xf32>
    %107 = vector.extract_strided_slice %98 {offsets = [0, 24], sizes = [8, 8], strides = [1, 1]} : vector<8x32xf32> to vector<8x8xf32>
    %108 = arith.mulf %105, %89 : vector<8x8xf32>
    %109 = arith.mulf %104, %107 : vector<8x8xf32>
    %110 = arith.addf %108, %109 : vector<8x8xf32>
    %111 = math.tanh %110 : vector<8x8xf32>
    %112 = arith.mulf %106, %111 : vector<8x8xf32>
    %113 = vector.extract_strided_slice %1 {offsets = [32, 0], sizes = [8, 12], strides = [1, 1]} : vector<64x12xf32> to vector<8x12xf32>
    %cst_31 = arith.constant dense<0.000000e+00> : vector<8x12xf32>
    %114 = tpu.matmul %112, %113, %cst_31 {dimension_numbers = #tpu.dot_dimension_numbers<[1], [0], [0], [1], [0, 0, 1, 1], [], []>} : vector<8x8xf32>, vector<8x12xf32>, vector<8x12xf32> -> vector<8x12xf32>
    %115 = arith.addf %94, %114 : vector<8x12xf32>
    %116 = vector.extract_strided_slice %7 {offsets = [40, 0], sizes = [8, 32], strides = [1, 1]} : vector<64x32xf32> to vector<8x32xf32>
    %cst_32 = arith.constant dense<0.000000e+00> : vector<8x32xf32>
    %117 = tpu.matmul %112, %0, %cst_32 {dimension_numbers = #tpu.dot_dimension_numbers<[1], [0], [0], [1], [0, 0, 1, 1], [], []>} : vector<8x8xf32>, vector<8x32xf32>, vector<8x32xf32> -> vector<8x32xf32>
    %118 = arith.addf %116, %117 : vector<8x32xf32>
    %119 = math.tanh %118 : vector<8x32xf32>
    %120 = vector.extract_strided_slice %119 {offsets = [0, 0], sizes = [8, 24], strides = [1, 1]} : vector<8x32xf32> to vector<8x24xf32>
    %cst_33 = arith.constant 1.000000e+00 : f32
    %121 = vector.broadcast %cst_33 : f32 to vector<8x24xf32>
    %122 = arith.addf %120, %121 : vector<8x24xf32>
    %cst_34 = arith.constant 5.000000e-01 : f32
    %123 = vector.broadcast %cst_34 : f32 to vector<8x24xf32>
    %124 = arith.mulf %123, %122 : vector<8x24xf32>
    %125 = vector.extract_strided_slice %124 {offsets = [0, 0], sizes = [8, 8], strides = [1, 1]} : vector<8x24xf32> to vector<8x8xf32>
    %126 = vector.extract_strided_slice %124 {offsets = [0, 8], sizes = [8, 8], strides = [1, 1]} : vector<8x24xf32> to vector<8x8xf32>
    %127 = vector.extract_strided_slice %124 {offsets = [0, 16], sizes = [8, 8], strides = [1, 1]} : vector<8x24xf32> to vector<8x8xf32>
    %128 = vector.extract_strided_slice %119 {offsets = [0, 24], sizes = [8, 8], strides = [1, 1]} : vector<8x32xf32> to vector<8x8xf32>
    %129 = arith.mulf %126, %110 : vector<8x8xf32>
    %130 = arith.mulf %125, %128 : vector<8x8xf32>
    %131 = arith.addf %129, %130 : vector<8x8xf32>
    %132 = math.tanh %131 : vector<8x8xf32>
    %133 = arith.mulf %127, %132 : vector<8x8xf32>
    %134 = vector.extract_strided_slice %1 {offsets = [40, 0], sizes = [8, 12], strides = [1, 1]} : vector<64x12xf32> to vector<8x12xf32>
    %cst_35 = arith.constant dense<0.000000e+00> : vector<8x12xf32>
    %135 = tpu.matmul %133, %134, %cst_35 {dimension_numbers = #tpu.dot_dimension_numbers<[1], [0], [0], [1], [0, 0, 1, 1], [], []>} : vector<8x8xf32>, vector<8x12xf32>, vector<8x12xf32> -> vector<8x12xf32>
    %136 = arith.addf %115, %135 : vector<8x12xf32>
    %137 = vector.extract_strided_slice %7 {offsets = [48, 0], sizes = [8, 32], strides = [1, 1]} : vector<64x32xf32> to vector<8x32xf32>
    %cst_36 = arith.constant dense<0.000000e+00> : vector<8x32xf32>
    %138 = tpu.matmul %133, %0, %cst_36 {dimension_numbers = #tpu.dot_dimension_numbers<[1], [0], [0], [1], [0, 0, 1, 1], [], []>} : vector<8x8xf32>, vector<8x32xf32>, vector<8x32xf32> -> vector<8x32xf32>
    %139 = arith.addf %137, %138 : vector<8x32xf32>
    %140 = math.tanh %139 : vector<8x32xf32>
    %141 = vector.extract_strided_slice %140 {offsets = [0, 0], sizes = [8, 24], strides = [1, 1]} : vector<8x32xf32> to vector<8x24xf32>
    %cst_37 = arith.constant 1.000000e+00 : f32
    %142 = vector.broadcast %cst_37 : f32 to vector<8x24xf32>
    %143 = arith.addf %141, %142 : vector<8x24xf32>
    %cst_38 = arith.constant 5.000000e-01 : f32
    %144 = vector.broadcast %cst_38 : f32 to vector<8x24xf32>
    %145 = arith.mulf %144, %143 : vector<8x24xf32>
    %146 = vector.extract_strided_slice %145 {offsets = [0, 0], sizes = [8, 8], strides = [1, 1]} : vector<8x24xf32> to vector<8x8xf32>
    %147 = vector.extract_strided_slice %145 {offsets = [0, 8], sizes = [8, 8], strides = [1, 1]} : vector<8x24xf32> to vector<8x8xf32>
    %148 = vector.extract_strided_slice %145 {offsets = [0, 16], sizes = [8, 8], strides = [1, 1]} : vector<8x24xf32> to vector<8x8xf32>
    %149 = vector.extract_strided_slice %140 {offsets = [0, 24], sizes = [8, 8], strides = [1, 1]} : vector<8x32xf32> to vector<8x8xf32>
    %150 = arith.mulf %147, %131 : vector<8x8xf32>
    %151 = arith.mulf %146, %149 : vector<8x8xf32>
    %152 = arith.addf %150, %151 : vector<8x8xf32>
    %153 = math.tanh %152 : vector<8x8xf32>
    %154 = arith.mulf %148, %153 : vector<8x8xf32>
    %155 = vector.extract_strided_slice %1 {offsets = [48, 0], sizes = [8, 12], strides = [1, 1]} : vector<64x12xf32> to vector<8x12xf32>
    %cst_39 = arith.constant dense<0.000000e+00> : vector<8x12xf32>
    %156 = tpu.matmul %154, %155, %cst_39 {dimension_numbers = #tpu.dot_dimension_numbers<[1], [0], [0], [1], [0, 0, 1, 1], [], []>} : vector<8x8xf32>, vector<8x12xf32>, vector<8x12xf32> -> vector<8x12xf32>
    %157 = arith.addf %136, %156 : vector<8x12xf32>
    %158 = vector.extract_strided_slice %7 {offsets = [56, 0], sizes = [8, 32], strides = [1, 1]} : vector<64x32xf32> to vector<8x32xf32>
    %cst_40 = arith.constant dense<0.000000e+00> : vector<8x32xf32>
    %159 = tpu.matmul %154, %0, %cst_40 {dimension_numbers = #tpu.dot_dimension_numbers<[1], [0], [0], [1], [0, 0, 1, 1], [], []>} : vector<8x8xf32>, vector<8x32xf32>, vector<8x32xf32> -> vector<8x32xf32>
    %160 = arith.addf %158, %159 : vector<8x32xf32>
    %161 = math.tanh %160 : vector<8x32xf32>
    %162 = vector.extract_strided_slice %161 {offsets = [0, 0], sizes = [8, 24], strides = [1, 1]} : vector<8x32xf32> to vector<8x24xf32>
    %cst_41 = arith.constant 1.000000e+00 : f32
    %163 = vector.broadcast %cst_41 : f32 to vector<8x24xf32>
    %164 = arith.addf %162, %163 : vector<8x24xf32>
    %cst_42 = arith.constant 5.000000e-01 : f32
    %165 = vector.broadcast %cst_42 : f32 to vector<8x24xf32>
    %166 = arith.mulf %165, %164 : vector<8x24xf32>
    %167 = vector.extract_strided_slice %166 {offsets = [0, 0], sizes = [8, 8], strides = [1, 1]} : vector<8x24xf32> to vector<8x8xf32>
    %168 = vector.extract_strided_slice %166 {offsets = [0, 8], sizes = [8, 8], strides = [1, 1]} : vector<8x24xf32> to vector<8x8xf32>
    %169 = vector.extract_strided_slice %166 {offsets = [0, 16], sizes = [8, 8], strides = [1, 1]} : vector<8x24xf32> to vector<8x8xf32>
    %170 = vector.extract_strided_slice %161 {offsets = [0, 24], sizes = [8, 8], strides = [1, 1]} : vector<8x32xf32> to vector<8x8xf32>
    %171 = arith.mulf %168, %152 : vector<8x8xf32>
    %172 = arith.mulf %167, %170 : vector<8x8xf32>
    %173 = arith.addf %171, %172 : vector<8x8xf32>
    %174 = math.tanh %173 : vector<8x8xf32>
    %175 = arith.mulf %169, %174 : vector<8x8xf32>
    %176 = vector.extract_strided_slice %1 {offsets = [56, 0], sizes = [8, 12], strides = [1, 1]} : vector<64x12xf32> to vector<8x12xf32>
    %cst_43 = arith.constant dense<0.000000e+00> : vector<8x12xf32>
    %177 = tpu.matmul %175, %176, %cst_43 {dimension_numbers = #tpu.dot_dimension_numbers<[1], [0], [0], [1], [0, 0, 1, 1], [], []>} : vector<8x8xf32>, vector<8x12xf32>, vector<8x12xf32> -> vector<8x12xf32>
    %178 = arith.addf %157, %177 : vector<8x12xf32>
    %c0_44 = arith.constant 0 : index
    %c0_45 = arith.constant 0 : index
    %179 = vector.load %arg5[%c0_44, %c0_45] : memref<1x12xf32, #tpu.memory_space<vmem>>, vector<1x12xf32>
    %180 = vector.broadcast %179 : vector<1x12xf32> to vector<8x12xf32>
    %181 = arith.addf %178, %180 : vector<8x12xf32>
    %c0_46 = arith.constant 0 : index
    %c0_47 = arith.constant 0 : index
    %182 = vector.load %arg6[%c0_46, %c0_47] : memref<8x12xf32, #tpu.memory_space<vmem>>, vector<8x12xf32>
    tpu.vector_store %arg6[%c0_46, %c0_47], %181 {strides = array<i32>} : memref<8x12xf32, #tpu.memory_space<vmem>>, vector<8x12xf32>,
    return
  }
}

</mosaic_0001>

<bundles_post_ra>
// kernel: tpu_custom_call.1
= control target key start
LH: loop header
LB: loop body
LE: loop exit
PB: predicated region body
PF: predicated region fallthrough
CT: control target
= control target key end

     0   :  { %vm74_vm0 = vcmask 1045504   ;;  %vm49_vm1 = vcmask 48128   ;;  %s2006_s0 = inlined_call_operand.vmem [shape: f32[64,6], index: 0, kind: input, shape index: {}]   ;;  %s2007_s1 = inlined_call_operand.vmem [shape: f32[6,32], index: 1, kind: input, shape index: {}]   ;;  %s2008_s2 = inlined_call_operand.vmem [shape: f32[8,32], index: 2, kind: input, shape index: {}]   ;;  %s2009_s3 = inlined_call_operand.vmem [shape: f32[1,32], index: 3, kind: input, shape index: {}]   ;;  %s2010_s4 = inlined_call_operand.vmem [shape: f32[64,12], index: 4, kind: input, shape index: {}]   ;;  %s2011_s5 = inlined_call_operand.vmem [shape: f32[1,12], index: 5, kind: input, shape index: {}]   ;;  %s2012_s6 = inlined_call_operand.hbm [shape: f32[8,12], index: 6, kind: output, shape index: {}]  }
   0x1   :  { %v42_v0 = vld [vmem:[%s2007_s1] sm:$0x3f]  ;;  %v35_v2 = vld [vmem:[%s2006_s0 + $0x8] sm:$0xff] }
   0x2   :  { %v34_v1 = vld [vmem:[%s2006_s0] sm:$0xff]  ;;  %1612 = vmatprep.subr.msk.mxu0 %vm74_vm0, %v42_v0 }
   0x3   :  { %1614 = vmatprep.mubr.msk.f32.mxu0 %vm49_vm1, %v34_v1  ;;  %v1820_v3 = vld [vmem:[%s2008_s2] sm:$0xff] }
   0x4   :  { %11 = vsyncpa [#allocation3], 0  ;;  %1613 = vmatpush3.msk.msra.mxu0 %vm74_vm0, %v42_v0  ;;  %v1766_v4 = vmov 0.0   ;;  %vm1767_vm2 = vmmov 0   ;;  %v1839_v6 = vld [vmem:[%s2009_s3] ss:$0 sm:$0xff] }
   0x5   :  { %1626 = vmatprep.subr.mxu1 %v1766_v4  ;;  %1615 = vmatmul.mubr.msk.f32.vlgmr.msra.gmra.mxu0 %vm49_vm1, %v35_v2  ;;  %s1768_s29 = smov 104   ;;  %s1769_s30 = smov 8   ;;  %vm183_vm3 = vcmask 64512   ;;  %v36_v36 = vld [vmem:[%s2006_s0 + $0x10] sm:$0xff]  ;;  %v37_v37 = vld [vmem:[%s2006_s0 + $0x18] sm:$0xff]  ;;  %v38_v38 = vld [vmem:[%s2006_s0 + $0x20] sm:$0xff] }
   0x6   :  { %1627 = vmatpush3.msra.mxu1 %v1820_v3  ;;  %1628 = vmatprep.mubr.msk.f32.mxu1 %vm1767_vm2, %v1766_v4  ;;  %s1770_s3 = smov 112   ;;  %v26_v39 = vld [vmem:[%s2010_s4 + $0x8] sm:$0xff]  ;;  %v40_v41 = vld [vmem:[%s2006_s0 + $0x30] sm:$0xff]  ;;  %v41_v42 = vld [vmem:[%s2006_s0 + $0x38] sm:$0xff]  ;;  %s1771_s11 = smov [#allocation2]   ;;  %vm1529_vm4 = vcmask 97280  }
   0x7   :  { %1631 = vmatprep.subr.mxu1 %v1766_v4  ;;  %1629 = vmatmul.mubr.f32.vlgmr.msra.gmra.mxu1 %v1766_v4  ;;  %v39_v40 = vld [vmem:[%s2006_s0 + $0x28] sm:$0xff]  ;;  %v25_v46 = vld [vmem:[%s2010_s4] sm:$0xff]  ;;  %s1537_s12 = sshll.u32 %s1771_s11, 4  ;;  %s1538_s12 = int_to_ptr.vmem [resolvable:$true] %s1537_s12 }
   0x8   :  { %1646 = vmatprep.subr.mxu0 %v1766_v4  ;;  %1632 = vmatpush3.msra.mxu1 %v1820_v3  ;;  %p1749_p1 = scmp.lt.s32.totalorder %s1538_s12, %s1538_s12 }
   0x9   :  { %1633 = vmatprep.mubr.msk.f32.mxu1 %vm1767_vm2, %v1766_v4  ;;  %1647 = vmatpush3.msra.mxu0 %v1820_v3 }
   0xa   :  { %1636 = vmatprep.subr.mxu1 %v1766_v4  ;;  %1656 = vmatprep.subr.mxu0 %v1766_v4 }
   0xb   :  { %1617 = vmatprep.mubr.msk.f32.mxu0 %vm49_vm1, %v36_v36 }
   0xc   :  { %1618 = vmatmul.mubr.msk.f32.gmra.mxu0 %vm49_vm1, %v37_v37 }
   0xd   :  { %1620 = vmatprep.mubr.msk.f32.mxu0 %vm49_vm1, %v38_v38 }
  0x10   :  { %1621 = vmatmul.mubr.msk.f32.gmra.mxu0 %vm49_vm1, %v39_v40 }
  0x11   :  { %1623 = vmatprep.mubr.msk.f32.mxu0 %vm49_vm1, %v40_v41 }
  0x14   :  { %1624 = vmatmul.mubr.msk.f32.gmra.mxu0 %vm49_vm1, %v41_v42 }
  0x15   :  { %1648 = vmatprep.mubr.msk.f32.mxu0 %vm1767_vm2, %v1766_v4 }
  0xc5   :  { %v1616_v5 = vpop.f32.mrf.mxu0 }
  0xc6   :  { %v150_v24 = vadd.f32 %v1616_v5, %v1839_v6 }
  0xc7   :  { %v144_v7 = vpop.f32.mrf.mxu0  ;;  %v253_v8 = vpop.f32.mrf.mxu1 }
  0xc8   :  { %v145_v9 = vadd.f32 %v1839_v6, %v144_v7 }
  0xc9   :  { %v1630_v10 = vpop.f32.mrf.mxu1 }
  0xca   :  { %v257_v11 = vadd.f32 %v253_v8, %v145_v9 }
  0xcc   :  { %1712 = vtanh.f32 %v257_v11  ;;  %v1619_v48 = vpop.f32.mrf.mxu0  ;;  %v27_v11 = vld [vmem:[%s2010_s4 + $0x10] sm:$0xff] }
  0xce   :  { %v154_v49 = vpop.f32.mrf.mxu0 }
  0xcf   :  { %v155_v54 = vadd.f32 %v1839_v6, %v154_v49 }
  0xd0   :  { %v1899_v50 = vpop.f32.mrf.mxu0 }
  0xd2   :  { %v1901_v51 = vpop.f32.mrf.mxu0 }
  0xd4   :  { %v1903_v52 = vpop.f32.mrf.mxu0 }
  0xd6   :  { %v1905_v53 = vpop.f32.mrf.mxu0 }
  0xd9   :  { %v1713_v12 = vpop.eup %1712 }
  0xda   :  { %263 = vrot.lane.b32.xlu0 %v1713_v12, %s1768_s29  ;;  %v259_v13 = vadd.f32 1.0, %v1713_v12 }
  0xdc   :  { %v260_v14 = vmul.f32 0.5, %v259_v13 }
  0xde   :  { %v261_v17 = vmul.f32 0.0, %v260_v14 }
 0x14c   :  { %v264_v15 = vpop.permute.xlu0 %263 }
 0x14d   :  { %v266_v16 = vmul.f32 %v264_v15, %v260_v14  ;;  %v160_v15 = vadd.f32 %v1619_v48, %v1839_v6 }
 0x14f   :  { %268 = vrot.lane.b32.xlu0 %v266_v16, %s1769_s30 }
 0x1c1   :  { %v269_v18 = vpop.permute.xlu0 %268 }
 0x1c2   :  { %v271_v19 = vadd.f32 %v269_v18, %v261_v17 }
 0x1c4   :  { %1714 = vtanh.f32 %v271_v19 }
 0x1d1   :  { %v1715_v20 = vpop.eup %1714 }
 0x1d2   :  { %274 = vrot.lane.b32.xlu1 %v1715_v20, %s1769_s30 }
 0x244   :  { %v275_v21 = vpop.permute.xlu1 %274 }
 0x245   :  { %v277_v22 = vmul.f32 %v275_v21, %v260_v14 }
 0x247   :  { %279 = vrot.lane.b32.xlu1 %v277_v22, %s1770_s3 }
 0x2b9   :  { %v280_v23 = vpop.permute.xlu1 %279 }
 0x2ba   :  { %1634 = vmatmul.mubr.msk.f32.vlgmr.msra.gmra.mxu1 %vm183_vm3, %v280_v23 }
 0x2bb   :  { %1638 = vmatprep.mubr.msk.f32.mxu1 %vm1767_vm2, %v1766_v4  ;;  %1637 = vmatpush3.msra.mxu1 %v26_v39 }
 0x2bc   :  { %1641 = vmatprep.subr.mxu1 %v1766_v4 }
 0x37a   :  { %v349_v25 = vpop.f32.mrf.mxu1 }
 0x37b   :  { %v353_v26 = vadd.f32 %v349_v25, %v150_v24 }
 0x37c   :  { %v1635_v27 = vpop.f32.mrf.mxu1 }
 0x37d   :  { %1716 = vtanh.f32 %v353_v26 }
 0x38a   :  { %v1717_v28 = vpop.eup %1716 }
 0x38b   :  { %359 = vrot.lane.b32.xlu0 %v1717_v28, %s1768_s29  ;;  %v355_v29 = vadd.f32 1.0, %v1717_v28 }
 0x38d   :  { %v356_v30 = vmul.f32 0.5, %v355_v29 }
 0x38f   :  { %v357_v33 = vmul.f32 %v356_v30, %v271_v19 }
 0x3fd   :  { %v360_v31 = vpop.permute.xlu0 %359 }
 0x3fe   :  { %v362_v32 = vmul.f32 %v360_v31, %v356_v30  ;;  %v28_v31 = vld [vmem:[%s2010_s4 + $0x18] sm:$0xff] }
 0x400   :  { %364 = vrot.lane.b32.xlu1 %v362_v32, %s1769_s30 }
 0x472   :  { %v365_v34 = vpop.permute.xlu1 %364 }
 0x473   :  { %v367_v35 = vadd.f32 %v365_v34, %v357_v33 }
 0x475   :  { %1718 = vtanh.f32 %v367_v35 }
 0x482   :  { %v1719_v43 = vpop.eup %1718 }
 0x483   :  { %370 = vrot.lane.b32.xlu0 %v1719_v43, %s1769_s30 }
 0x4f5   :  { %v371_v44 = vpop.permute.xlu0 %370 }
 0x4f6   :  { %v373_v45 = vmul.f32 %v371_v44, %v356_v30 }
 0x4f8   :  { %375 = vrot.lane.b32.xlu1 %v373_v45, %s1770_s3 }
 0x56a   :  { %v376_v47 = vpop.permute.xlu1 %375 }
 0x56b   :  { %1639 = vmatmul.mubr.msk.f32.vlgmr.msra.gmra.mxu1 %vm183_vm3, %v376_v47  ;;  %1649 = vmatmul.mubr.msk.f32.vlgmr.msra.gmra.mxu0 %vm183_vm3, %v376_v47 }
 0x56c   :  { %1642 = vmatpush3.msra.mxu1 %v25_v46  ;;  %1643 = vmatprep.mubr.msk.f32.mxu1 %vm1767_vm2, %v1766_v4 }
 0x56d   :  { %1657 = vmatpush3.msra.mxu0 %v1820_v3  ;;  %1651 = vmatprep.subr.mxu1 %v1766_v4 }
 0x56e   :  { %1658 = vmatprep.mubr.msk.f32.mxu0 %vm1767_vm2, %v1766_v4  ;;  %1666 = vmatprep.subr.mxu0 %v1766_v4 }
 0x56f   :  { %1644 = vmatmul.mubr.msk.f32.vlgmr.msra.gmra.mxu1 %vm183_vm3, %v280_v23 }
 0x570   :  { %1653 = vmatprep.mubr.msk.f32.mxu1 %vm1767_vm2, %v1766_v4  ;;  %1652 = vmatpush3.msra.mxu1 %v27_v11 }
 0x571   :  { %1661 = vmatprep.subr.mxu1 %v1766_v4 }
 0x62b   :  { %v445_v55 = vpop.f32.mrf.mxu1  ;;  %v585_v56 = vpop.f32.mrf.mxu0 }
 0x62c   :  { %v589_v57 = vadd.f32 %v585_v56, %v155_v54  ;;  %v29_v54 = vld [vmem:[%s2010_s4 + $0x20] sm:$0xff] }
 0x62d   :  { %v1640_v58 = vpop.f32.mrf.mxu1  ;;  %v1650_v59 = vpop.f32.mrf.mxu0 }
 0x62e   :  { %1720 = vtanh.f32 %v589_v57  ;;  %v170_v58 = vadd.f32 %v1899_v50, %v1839_v6 }
 0x62f   :  { %v515_v60 = vpop.f32.mrf.mxu1 }
 0x630   :  { %v516_v61 = vadd.f32 %v515_v60, %v445_v55 }
 0x631   :  { %v1645_v62 = vpop.f32.mrf.mxu1 }
 0x63b   :  { %v1721_v63 = vpop.eup %1720 }
 0x63c   :  { %595 = vrot.lane.b32.xlu0 %v1721_v63, %s1768_s29  ;;  %v591_v0 = vadd.f32 1.0, %v1721_v63 }
 0x63e   :  { %v592_v1 = vmul.f32 0.5, %v591_v0 }
 0x640   :  { %v593_v7 = vmul.f32 %v592_v1, %v367_v35  ;;  %v165_v35 = vadd.f32 %v1839_v6, %v1901_v51 }
 0x6ae   :  { %v596_v2 = vpop.permute.xlu0 %595 }
 0x6af   :  { %v598_v5 = vmul.f32 %v596_v2, %v592_v1 }
 0x6b1   :  { %600 = vrot.lane.b32.xlu1 %v598_v5, %s1769_s30 }
 0x723   :  { %v601_v8 = vpop.permute.xlu1 %600 }
 0x724   :  { %v603_v9 = vadd.f32 %v601_v8, %v593_v7 }
 0x726   :  { %1722 = vtanh.f32 %v603_v9 }
 0x733   :  { %v1723_v10 = vpop.eup %1722 }
 0x734   :  { %606 = vrot.lane.b32.xlu0 %v1723_v10, %s1769_s30 }
 0x7a6   :  { %v607_v12 = vpop.permute.xlu0 %606 }
 0x7a7   :  { %v609_v13 = vmul.f32 %v607_v12, %v592_v1  ;;  %v30_v12 = vld [vmem:[%s2010_s4 + $0x28] sm:$0xff] }
 0x7a9   :  { %611 = vrot.lane.b32.xlu1 %v609_v13, %s1770_s3 }
 0x81b   :  { %v612_v14 = vpop.permute.xlu1 %611 }
 0x81c   :  { %1654 = vmatmul.mubr.msk.f32.vlgmr.msra.gmra.mxu1 %vm183_vm3, %v612_v14  ;;  %1659 = vmatmul.mubr.msk.f32.vlgmr.msra.gmra.mxu0 %vm183_vm3, %v612_v14 }
 0x81d   :  { %1667 = vmatpush3.msra.mxu0 %v1820_v3  ;;  %1668 = vmatprep.mubr.msk.f32.mxu0 %vm1767_vm2, %v1766_v4 }
 0x81e   :  { %1663 = vmatprep.mubr.msk.f32.mxu1 %vm1767_vm2, %v1766_v4  ;;  %1676 = vmatprep.subr.mxu0 %v1766_v4 }
 0x81f   :  { %1662 = vmatpush3.msra.mxu1 %v28_v31 }
 0x820   :  { %1671 = vmatprep.subr.mxu1 %v1766_v4 }
 0x8dc   :  { %v681_v16 = vpop.f32.mrf.mxu1  ;;  %v752_v17 = vpop.f32.mrf.mxu0 }
 0x8dd   :  { %v685_v18 = vadd.f32 %v681_v16, %v516_v61  ;;  %v756_v19 = vadd.f32 %v752_v17, %v160_v15  ;;  %v175_v16 = vadd.f32 %v1839_v6, %v1905_v53 }
 0x8de   :  { %v1655_v20 = vpop.f32.mrf.mxu1  ;;  %v1660_v21 = vpop.f32.mrf.mxu0 }
 0x8df   :  { %1724 = vtanh.f32 %v756_v19 }
 0x8ec   :  { %v1725_v22 = vpop.eup %1724 }
 0x8ed   :  { %762 = vrot.lane.b32.xlu0 %v1725_v22, %s1768_s29  ;;  %v758_v23 = vadd.f32 1.0, %v1725_v22 }
 0x8ef   :  { %v759_v24 = vmul.f32 0.5, %v758_v23 }
 0x8f1   :  { %v760_v27 = vmul.f32 %v759_v24, %v603_v9 }
 0x95f   :  { %v763_v25 = vpop.permute.xlu0 %762 }
 0x960   :  { %v765_v26 = vmul.f32 %v763_v25, %v759_v24 }
 0x962   :  { %767 = vrot.lane.b32.xlu1 %v765_v26, %s1769_s30 }
 0x9d4   :  { %v768_v28 = vpop.permute.xlu1 %767 }
 0x9d5   :  { %v770_v29 = vadd.f32 %v768_v28, %v760_v27 }
 0x9d7   :  { %1726 = vtanh.f32 %v770_v29 }
 0x9e4   :  { %v1727_v30 = vpop.eup %1726 }
 0x9e5   :  { %773 = vrot.lane.b32.xlu0 %v1727_v30, %s1769_s30  ;;  %v31_v30 = vld [vmem:[%s2010_s4 + $0x30] sm:$0xff] }
 0xa57   :  { %v774_v32 = vpop.permute.xlu0 %773 }
 0xa58   :  { %v776_v33 = vmul.f32 %v774_v32, %v759_v24 }
 0xa5a   :  { %778 = vrot.lane.b32.xlu1 %v776_v33, %s1770_s3 }
 0xacc   :  { %v779_v34 = vpop.permute.xlu1 %778 }
 0xacd   :  { %1664 = vmatmul.mubr.msk.f32.vlgmr.msra.gmra.mxu1 %vm183_vm3, %v779_v34  ;;  %1669 = vmatmul.mubr.msk.f32.vlgmr.msra.gmra.mxu0 %vm183_vm3, %v779_v34  ;;  %v180_v34 = vadd.f32 %v1903_v52, %v1839_v6  ;;  %v32_v6 = vld [vmem:[%s2010_s4 + $0x38] sm:$0xff]  ;;  %s1744_s4 = scalar_lea.vmem %s1538_s12, 128 }
 0xace   :  { %1677 = vmatpush3.msra.mxu0 %v1820_v3  ;;  %1678 = vmatprep.mubr.msk.f32.mxu0 %vm1767_vm2, %v1766_v4  ;;  %p1745_p0 = scmp.ne.s32.totalorder %s1538_s12, %s1744_s4  ;;  %p1750_p2 = scmp.lt.s32.totalorder %s1744_s4, %s1744_s4 }
 0xacf   :  { %1673 = vmatprep.mubr.msk.f32.mxu1 %vm1767_vm2, %v1766_v4  ;;  %1686 = vmatprep.subr.mxu0 %v1766_v4 }
 0xad0   :  { %1672 = vmatpush3.msra.mxu1 %v29_v54  ;;  %p1751_p3 = por %p1750_p2, %p1749_p1 }
 0xad1   :  { %1681 = vmatprep.subr.mxu1 %v1766_v4 }
 0xad2   :  { %p1752_p4 = pnand %p1751_p3, %p1745_p0 }
 0xb8d   :  { %v848_v36 = vpop.f32.mrf.mxu1  ;;  %v919_v37 = vpop.f32.mrf.mxu0 }
 0xb8e   :  { %v852_v38 = vadd.f32 %v848_v36, %v685_v18  ;;  %v923_v39 = vadd.f32 %v919_v37, %v165_v35 }
 0xb8f   :  { %v1665_v40 = vpop.f32.mrf.mxu1  ;;  %v1670_v41 = vpop.f32.mrf.mxu0 }
 0xb90   :  { %1728 = vtanh.f32 %v923_v39 }
 0xb9d   :  { %v1729_v42 = vpop.eup %1728 }
 0xb9e   :  { %929 = vrot.lane.b32.xlu0 %v1729_v42, %s1768_s29  ;;  %v925_v43 = vadd.f32 1.0, %v1729_v42 }
 0xba0   :  { %v926_v44 = vmul.f32 0.5, %v925_v43 }
 0xba2   :  { %v927_v47 = vmul.f32 %v926_v44, %v770_v29 }
 0xc10   :  { %v930_v45 = vpop.permute.xlu0 %929 }
 0xc11   :  { %v932_v46 = vmul.f32 %v930_v45, %v926_v44 }
 0xc13   :  { %934 = vrot.lane.b32.xlu1 %v932_v46, %s1769_s30 }
 0xc85   :  { %v935_v48 = vpop.permute.xlu1 %934 }
 0xc86   :  { %v937_v49 = vadd.f32 %v935_v48, %v927_v47 }
 0xc88   :  { %1730 = vtanh.f32 %v937_v49 }
 0xc95   :  { %v1731_v51 = vpop.eup %1730 }
 0xc96   :  { %940 = vrot.lane.b32.xlu0 %v1731_v51, %s1769_s30 }
 0xd08   :  { %v941_v55 = vpop.permute.xlu0 %940 }
 0xd09   :  { %v943_v56 = vmul.f32 %v941_v55, %v926_v44  ;;  %v1570_v55 = vld [vmem:[%s2011_s5] ss:$0 sm:$0xff] }
 0xd0b   :  { %945 = vrot.lane.b32.xlu1 %v943_v56, %s1770_s3 }
 0xd7d   :  { %v946_v57 = vpop.permute.xlu1 %945 }
 0xd7e   :  { %1674 = vmatmul.mubr.msk.f32.vlgmr.msra.gmra.mxu1 %vm183_vm3, %v946_v57  ;;  %1679 = vmatmul.mubr.msk.f32.vlgmr.msra.gmra.mxu0 %vm183_vm3, %v946_v57 }
 0xd7f   :  { %1687 = vmatpush3.msra.mxu0 %v1820_v3  ;;  %1688 = vmatprep.mubr.msk.f32.mxu0 %vm1767_vm2, %v1766_v4 }
 0xd80   :  { %1683 = vmatprep.mubr.msk.f32.mxu1 %vm1767_vm2, %v1766_v4  ;;  %1696 = vmatprep.subr.mxu0 %v1766_v4 }
 0xd81   :  { %1682 = vmatpush3.msra.mxu1 %v30_v12 }
 0xd82   :  { %1691 = vmatprep.subr.mxu1 %v1766_v4 }
 0xe3e   :  { %v1015_v59 = vpop.f32.mrf.mxu1  ;;  %v1086_v60 = vpop.f32.mrf.mxu0 }
 0xe3f   :  { %v1019_v61 = vadd.f32 %v1015_v59, %v852_v38  ;;  %v1090_v62 = vadd.f32 %v1086_v60, %v170_v58 }
 0xe40   :  { %v1675_v63 = vpop.f32.mrf.mxu1  ;;  %v1680_v0 = vpop.f32.mrf.mxu0 }
 0xe41   :  { %1732 = vtanh.f32 %v1090_v62 }
 0xe4e   :  { %v1733_v1 = vpop.eup %1732 }
 0xe4f   :  { %1096 = vrot.lane.b32.xlu0 %v1733_v1, %s1768_s29  ;;  %v1092_v2 = vadd.f32 1.0, %v1733_v1 }
 0xe51   :  { %v1093_v5 = vmul.f32 0.5, %v1092_v2 }
 0xe53   :  { %v1094_v9 = vmul.f32 %v1093_v5, %v937_v49 }
 0xec1   :  { %v1097_v7 = vpop.permute.xlu0 %1096 }
 0xec2   :  { %v1099_v8 = vmul.f32 %v1097_v7, %v1093_v5 }
 0xec4   :  { %1101 = vrot.lane.b32.xlu1 %v1099_v8, %s1769_s30 }
 0xf36   :  { %v1102_v10 = vpop.permute.xlu1 %1101 }
 0xf37   :  { %v1104_v11 = vadd.f32 %v1102_v10, %v1094_v9 }
 0xf39   :  { %1734 = vtanh.f32 %v1104_v11 }
 0xf46   :  { %v1735_v50 = vpop.eup %1734 }
 0xf47   :  { %1107 = vrot.lane.b32.xlu0 %v1735_v50, %s1769_s30 }
 0xfb9   :  { %v1108_v13 = vpop.permute.xlu0 %1107 }
 0xfba   :  { %v1110_v14 = vmul.f32 %v1108_v13, %v1093_v5 }
 0xfbc   :  { %1112 = vrot.lane.b32.xlu1 %v1110_v14, %s1770_s3 }
0x102e   :  { %v1113_v15 = vpop.permute.xlu1 %1112 }
0x102f   :  { %1684 = vmatmul.mubr.msk.f32.vlgmr.msra.gmra.mxu1 %vm183_vm3, %v1113_v15  ;;  %1689 = vmatmul.mubr.msk.f32.vlgmr.msra.gmra.mxu0 %vm183_vm3, %v1113_v15 }
0x1030   :  { %1697 = vmatpush3.msra.mxu0 %v1820_v3  ;;  %1698 = vmatprep.mubr.msk.f32.mxu0 %vm1767_vm2, %v1766_v4 }
0x1031   :  { %1693 = vmatprep.mubr.msk.f32.mxu1 %vm1767_vm2, %v1766_v4  ;;  %1692 = vmatpush3.msra.mxu1 %v31_v30 }
0x1032   :  { %1701 = vmatprep.subr.mxu1 %v1766_v4 }
0x10ef   :  { %v1182_v17 = vpop.f32.mrf.mxu1  ;;  %v1253_v18 = vpop.f32.mrf.mxu0 }
0x10f0   :  { %v1186_v19 = vadd.f32 %v1182_v17, %v1019_v61  ;;  %v1257_v20 = vadd.f32 %v1253_v18, %v175_v16 }
0x10f1   :  { %v1685_v21 = vpop.f32.mrf.mxu1  ;;  %v1690_v22 = vpop.f32.mrf.mxu0 }
0x10f2   :  { %1736 = vtanh.f32 %v1257_v20 }
0x10ff   :  { %v1737_v23 = vpop.eup %1736 }
0x1100   :  { %1263 = vrot.lane.b32.xlu0 %v1737_v23, %s1768_s29  ;;  %v1259_v3 = vadd.f32 1.0, %v1737_v23 }
0x1102   :  { %v1260_v24 = vmul.f32 0.5, %v1259_v3 }
0x1104   :  { %v1261_v27 = vmul.f32 %v1260_v24, %v1104_v11 }
0x1172   :  { %v1264_v25 = vpop.permute.xlu0 %1263 }
0x1173   :  { %v1266_v26 = vmul.f32 %v1264_v25, %v1260_v24 }
0x1175   :  { %1268 = vrot.lane.b32.xlu1 %v1266_v26, %s1769_s30 }
0x11e7   :  { %v1269_v28 = vpop.permute.xlu1 %1268 }
0x11e8   :  { %v1271_v29 = vadd.f32 %v1269_v28, %v1261_v27 }
0x11ea   :  { %1738 = vtanh.f32 %v1271_v29 }
0x11f7   :  { %v1739_v53 = vpop.eup %1738 }
0x11f8   :  { %1274 = vrot.lane.b32.xlu0 %v1739_v53, %s1769_s30 }
0x126a   :  { %v1275_v31 = vpop.permute.xlu0 %1274 }
0x126b   :  { %v1277_v32 = vmul.f32 %v1275_v31, %v1260_v24 }
0x126d   :  { %1279 = vrot.lane.b32.xlu1 %v1277_v32, %s1770_s3 }
0x12df   :  { %v1280_v33 = vpop.permute.xlu1 %1279 }
0x12e0   :  { %1694 = vmatmul.mubr.msk.f32.vlgmr.msra.gmra.mxu1 %vm183_vm3, %v1280_v33  ;;  %1699 = vmatmul.mubr.msk.f32.vlgmr.msra.gmra.mxu0 %vm183_vm3, %v1280_v33 }
0x12e1   :  { %1703 = vmatprep.mubr.msk.f32.mxu1 %vm1767_vm2, %v1766_v4  ;;  %1702 = vmatpush3.msra.mxu1 %v32_v6 }
0x13a0   :  { %v1349_v35 = vpop.f32.mrf.mxu1  ;;  %v1420_v36 = vpop.f32.mrf.mxu0 }
0x13a1   :  { %v1353_v37 = vadd.f32 %v1349_v35, %v1186_v19  ;;  %v1424_v38 = vadd.f32 %v1420_v36, %v180_v34 }
0x13a2   :  { %v1695_v39 = vpop.f32.mrf.mxu1  ;;  %v1700_v40 = vpop.f32.mrf.mxu0 }
0x13a3   :  { %1740 = vtanh.f32 %v1424_v38 }
0x13b0   :  { %v1741_v41 = vpop.eup %1740 }
0x13b1   :  { %1430 = vrot.lane.b32.xlu0 %v1741_v41, %s1768_s29  ;;  %v1426_v42 = vadd.f32 1.0, %v1741_v41 }
0x13b3   :  { %v1427_v43 = vmul.f32 0.5, %v1426_v42 }
0x13b5   :  { %v1428_v4 = vmul.f32 %v1427_v43, %v1271_v29 }
0x1423   :  { %v1431_v44 = vpop.permute.xlu0 %1430 }
0x1424   :  { %v1433_v45 = vmul.f32 %v1431_v44, %v1427_v43 }
0x1426   :  { %1435 = vrot.lane.b32.xlu1 %v1433_v45, %s1769_s30 }
0x1498   :  { %v1436_v46 = vpop.permute.xlu1 %1435 }
0x1499   :  { %v1438_v47 = vadd.f32 %v1436_v46, %v1428_v4 }
0x149b   :  { %1742 = vtanh.f32 %v1438_v47 }
0x14a8   :  { %v1743_v52 = vpop.eup %1742 }
0x14a9   :  { %1441 = vrot.lane.b32.xlu0 %v1743_v52, %s1769_s30 }
0x151b   :  { %v1442_v48 = vpop.permute.xlu0 %1441 }
0x151c   :  { %v1444_v49 = vmul.f32 %v1442_v48, %v1427_v43 }
0x151e   :  { %1446 = vrot.lane.b32.xlu1 %v1444_v49, %s1770_s3 }
0x1590   :  { %v1447_v51 = vpop.permute.xlu1 %1446 }
0x1591   :  { %1704 = vmatmul.mubr.msk.f32.vlgmr.msra.gmra.mxu1 %vm183_vm3, %v1447_v51 }
0x1651   :  { %v1516_v54 = vpop.f32.mrf.mxu1 }
0x1652   :  { %v1520_v56 = vadd.f32 %v1516_v54, %v1353_v37 }
0x1653   :  { %v1705_v57 = vpop.f32.mrf.mxu1 }
0x1654   :  { %v1528_v58 = vadd.f32 %v1570_v55, %v1520_v56 }
0x1656   :  { %1530 = vst.msk [vmem:[#allocation2] sm:$0xff] %vm1529_vm4, %v1528_v58 }
0x1657   :  { %1755 = shalt.err (!%p1752_p4)
}
0x1658   :  { %1540 = dma.vmem_to_hbm [thread:$0]  %s1538_s12, 128, %s2012_s6, [#allocation3]  }
0x1659   :  { %1764 = dma.done.wait [#allocation3], 128  }
0x165a   :  { %1765 = vsyncadd [#allocation3], 4294967168 }
0x165b   :  { %1544 = vsyncpa [#allocation3], 1 }

</bundles_post_ra>
